<compile_context>
chip_gen: v5e
topology: v5e:2x2
jax: 0.10.0
libtpu: 0.0.40
codegen_flags: <defaults>
</compile_context>

<pallas_src>
import jax
import jax.numpy as jnp
from jax.experimental import pallas as pl
from jax.experimental.pallas import tpu as pltpu


def _round_up(x, m):
    return ((x + m - 1) // m) * m


def _sublane_multiple(dtype):
    itemsize = jnp.dtype(dtype).itemsize
    if itemsize >= 4:
        return 8
    if itemsize == 2:
        return 16
    return 32


# --------------------------- kernels ---------------------------

def _single_k_kernel(x_ref, w_ref, b_ref, o_ref):
    """Whole reduction fits in one tile: o = (x @ W + b) in one MXU pass."""
    acc = jnp.dot(x_ref[...], w_ref[...], preferred_element_type=jnp.float32)
    o_ref[...] = (acc + b_ref[...]).astype(o_ref.dtype)


def _reduce_k_kernel(x_ref, w_ref, b_ref, o_ref, acc_ref):
    """K tiled over grid axis 2 ("arbitrary"); f32 scratch accumulator.

    Bias init is fused into the first accumulation; the output (in its final
    dtype) is stored only on the last K step.
    """
    k = pl.program_id(2)
    partial = jnp.dot(x_ref[...], w_ref[...], preferred_element_type=jnp.float32)

    @pl.when(k == 0)
    def _():
        acc_ref[...] = b_ref[...] + partial

    @pl.when(k > 0)
    def _():
        acc_ref[...] += partial

    @pl.when(k == pl.num_programs(2) - 1)
    def _():
        o_ref[...] = acc_ref[...].astype(o_ref.dtype)


# --------------------------- wrapper ---------------------------

def add_forward(x, w_stack, b_stack, compute_dtype=None):
    """forward of Add([Linear_0, ..., Linear_{S-1}]).

    x: [B, K], w_stack: [S, K, N], b_stack: [S, 1, N]  ->  [B, N] (x.dtype)

    compute_dtype: optionally cast x / summed W to e.g. bf16 (recommended on
    v6e/v7x); the matmul accumulates in f32 either way.
    """
    B, K = x.shape
    S, _, N = w_stack.shape
    out_dtype = x.dtype

    # ---- Algebraic fold of the branch sum (branches are Linear). ----
    w = jnp.sum(w_stack, axis=0)                        # [K, N]
    b = jnp.sum(b_stack, axis=0).astype(jnp.float32)    # [1, N] (kept f32)

    # Cast BEFORE padding so the pad pass writes narrow bytes.
    xc = x
    if compute_dtype is not None:
        xc = x.astype(compute_dtype)
        w = w.astype(compute_dtype)

    # ---- Tile selection. ----
    sub_m = max(_sublane_multiple(xc.dtype), _sublane_multiple(out_dtype))

    # M axis.
    if B <= 128:
        tb = _round_up(B, sub_m)
        Mp = tb
    else:
        tb = 512 if B >= 512 else (256 if B >= 256 else 128)
        Mp = _round_up(B, tb)

    # K axis: pick tk first, then pad K to a multiple of it.
    K128 = _round_up(K, 128)
    if K128 <= 512:
        tk = K128
    else:
        # Prefer 512-deep K tiles unless the zero-padding waste gets large.
        tk = 512 if (_round_up(K128, 512) - K128) <= K128 // 4 else 256
    Kp = _round_up(K128, tk)

    # N axis: 256-wide tiles for the 256-wide MXUs of v6e/v7x.
    if N <= 128:
        tn = 128
        Np = 128
    else:
        tn = 256
        Np = _round_up(N, 256)
        if (Mp // tb) == 1 and (Np // tn) < 2 and _round_up(N, 128) // 128 >= 2:
            # Expose >=2 parallel N tiles so v7x's second TensorCore has work.
            tn = 128
            Np = _round_up(N, 128)

    # Zero padding keeps the matmul exact on the valid region.
    x_p = jnp.pad(xc, ((0, Mp - B), (0, Kp - K)))
    w_p = jnp.pad(w, ((0, Kp - K), (0, Np - N)))
    b_p = jnp.pad(b, ((0, 0), (0, Np - N)))

    cost = pl.CostEstimate(
        flops=2 * Mp * Np * Kp,
        transcendentals=0,
        bytes_accessed=(x_p.size * x_p.dtype.itemsize
                        + w_p.size * w_p.dtype.itemsize
                        + b_p.size * 4
                        + Mp * Np * jnp.dtype(out_dtype).itemsize),
    )

    n_k = Kp // tk
    if n_k == 1:
        # Whole reduction in one pass: drop the K grid axis entirely.
        grid_spec = pltpu.PrefetchScalarGridSpec(
            num_scalar_prefetch=0,
            grid=(Mp // tb, Np // tn),
            in_specs=[
                pl.BlockSpec((tb, Kp), lambda i, j: (i, 0)),   # x tile
                pl.BlockSpec((Kp, tn), lambda i, j: (0, j)),   # summed W tile
                pl.BlockSpec((1, tn), lambda i, j: (0, j)),    # summed bias
            ],
            out_specs=pl.BlockSpec((tb, tn), lambda i, j: (i, j)),
        )
        kernel = _single_k_kernel
        dims = ("parallel", "parallel")
    else:
        grid_spec = pltpu.PrefetchScalarGridSpec(
            num_scalar_prefetch=0,
            grid=(Mp // tb, Np // tn, n_k),
            in_specs=[
                pl.BlockSpec((tb, tk), lambda i, j, k: (i, k)),   # x tile
                pl.BlockSpec((tk, tn), lambda i, j, k: (k, j)),   # summed W tile
                pl.BlockSpec((1, tn), lambda i, j, k: (0, j)),    # summed bias
            ],
            out_specs=pl.BlockSpec((tb, tn), lambda i, j, k: (i, j)),
            scratch_shapes=[pltpu.VMEM((tb, tn), jnp.float32)],
        )
        kernel = _reduce_k_kernel
        dims = ("parallel", "parallel", "arbitrary")

    out_padded = pl.pallas_call(
        kernel,
        out_shape=jax.ShapeDtypeStruct((Mp, Np), out_dtype),
        grid_spec=grid_spec,
        compiler_params=pltpu.CompilerParams(dimension_semantics=dims),
        cost_estimate=cost,
    )(x_p, w_p, b_p)

    return out_padded[:B, :N]


def reference_forward(x, w_stack, b_stack):
    """Pure-JAX reference: res = seq0(x); res += seq_i(x) for i>0."""
    outs = jnp.einsum("bk,skn->sbn", x, w_stack) + b_stack  # [S, B, N]
    return jnp.sum(outs, axis=0)


if __name__ == "__main__":
    key = jax.random.PRNGKey(0)

    # --- Test 1: small f32 shapes (single-K-pass kernel path). ---
    B, K, N, S = 8, 32, 32, 3  # batch, in-features, out-features, num branches
    kx, kw, kb = jax.random.split(key, 3)
    x = jax.random.normal(kx, (B, K), dtype=jnp.float32)
    w_stack = jax.random.normal(kw, (S, K, N), dtype=jnp.float32) * 0.1
    b_stack = jax.random.normal(kb, (S, 1, N), dtype=jnp.float32) * 0.1

    out = jax.block_until_ready(add_forward(x, w_stack, b_stack))
    ref = reference_forward(x, w_stack, b_stack)
    assert out.shape == (B, N) and out.dtype == x.dtype
    assert jnp.allclose(out, ref, atol=1e-4, rtol=1e-4), "f32 single-K mismatch"

    # --- Test 2: K > 512 exercises the K-reduction (resident accumulator) path. ---
    B2, K2, N2, S2 = 8, 640, 48, 2
    k2x, k2w, k2b = jax.random.split(jax.random.PRNGKey(1), 3)
    x2 = jax.random.normal(k2x, (B2, K2), dtype=jnp.float32)
    w2 = jax.random.normal(k2w, (S2, K2, N2), dtype=jnp.float32) * 0.05
    b2 = jax.random.normal(k2b, (S2, 1, N2), dtype=jnp.float32) * 0.05
    out2 = jax.block_until_ready(add_forward(x2, w2, b2))
    ref2 = reference_forward(x2, w2, b2)
    assert out2.shape == (B2, N2)
    assert jnp.allclose(out2, ref2, atol=2e-3, rtol=2e-3), "f32 reduce-K mismatch"

    # --- Test 3: bf16 compute (f32 accumulate), looser tolerance. ---
    out3 = jax.block_until_ready(
        add_forward(x, w_stack, b_stack, compute_dtype=jnp.bfloat16))
    assert out3.dtype == x.dtype
    assert jnp.allclose(out3, ref, atol=5e-2, rtol=5e-2), "bf16 mismatch"

    print("KERNEL_OK")
</pallas_src>

<mosaic_0001>
module attributes {stable_mosaic.version = 11 : i64} {
  func.func @_single_k_kernel(%arg0: i32, %arg1: i32, %arg2: memref<8x128xf32, #tpu.memory_space<vmem>>, %arg3: memref<128x128xf32, #tpu.memory_space<vmem>>, %arg4: memref<1x128xf32, #tpu.memory_space<vmem>>, %arg5: memref<8x128xf32, #tpu.memory_space<vmem>>) attributes {dimension_semantics = [#tpu.dimension_semantics<parallel>, #tpu.dimension_semantics<parallel>], iteration_bounds = array<i64: 1, 1>, scalar_prefetch = 0 : i64, scratch_operands = 0 : i64, tpu.core_type = #tpu.core_type<tc>, window_params = [{transform_indices = @transform_0, window_bounds = array<i64: 8, 128>}, {transform_indices = @transform_1, window_bounds = array<i64: 128, 128>}, {transform_indices = @transform_2, window_bounds = array<i64: 1, 128>}, {transform_indices = @transform_3, window_bounds = array<i64: 8, 128>}]} {
    %c0 = arith.constant 0 : index
    %c0_0 = arith.constant 0 : index
    %0 = vector.load %arg2[%c0, %c0_0] : memref<8x128xf32, #tpu.memory_space<vmem>>, vector<8x128xf32>
    %c0_1 = arith.constant 0 : index
    %c0_2 = arith.constant 0 : index
    %1 = vector.load %arg3[%c0_1, %c0_2] : memref<128x128xf32, #tpu.memory_space<vmem>>, vector<128x128xf32>
    %cst = arith.constant dense<0.000000e+00> : vector<8x128xf32>
    %2 = tpu.matmul %0, %1, %cst {dimension_numbers = #tpu.dot_dimension_numbers<[1], [0], [0], [1], [0, 0, 1, 1], [], []>} : vector<8x128xf32>, vector<128x128xf32>, vector<8x128xf32> -> vector<8x128xf32>
    %c0_3 = arith.constant 0 : index
    %c0_4 = arith.constant 0 : index
    %3 = vector.load %arg4[%c0_3, %c0_4] : memref<1x128xf32, #tpu.memory_space<vmem>>, vector<1x128xf32>
    %4 = vector.broadcast %3 : vector<1x128xf32> to vector<8x128xf32>
    %5 = arith.addf %2, %4 : vector<8x128xf32>
    %c0_5 = arith.constant 0 : index
    %c0_6 = arith.constant 0 : index
    %6 = vector.load %arg5[%c0_5, %c0_6] : memref<8x128xf32, #tpu.memory_space<vmem>>, vector<8x128xf32>
    tpu.vector_store %arg5[%c0_5, %c0_6], %5 {strides = array<i32>} : memref<8x128xf32, #tpu.memory_space<vmem>>, vector<8x128xf32>,
    return
  }
  func.func @transform_0(%arg0: i32, %arg1: i32) -> (i32, i32) {
    %c0_i32 = arith.constant 0 : i32
    %c0_i32_0 = arith.constant 0 : i32
    return %arg0, %c0_i32 : i32, i32
  }
  func.func @transform_1(%arg0: i32, %arg1: i32) -> (i32, i32) {
    %c0_i32 = arith.constant 0 : i32
    %c0_i32_0 = arith.constant 0 : i32
    return %c0_i32, %arg1 : i32, i32
  }
  func.func @transform_2(%arg0: i32, %arg1: i32) -> (i32, i32) {
    %c0_i32 = arith.constant 0 : i32
    %c0_i32_0 = arith.constant 0 : i32
    return %c0_i32, %arg1 : i32, i32
  }
  func.func @transform_3(%arg0: i32, %arg1: i32) -> (i32, i32) {
    %c0_i32 = arith.constant 0 : i32
    return %arg0, %arg1 : i32, i32
  }
}

</mosaic_0001>

<bundles_post_ra>
// kernel: tpu_custom_call.1
= control target key start
LH: loop header
LB: loop body
LE: loop exit
PB: predicated region body
PF: predicated region fallthrough
CT: control target
= control target key end

     0   :  { %8 = vsyncpa [#allocation3], 0  ;;  %s226_s0 = inlined_call_operand.hbm [shape: f32[8,128], index: 0, kind: input, shape index: {}]   ;;  %s227_s1 = inlined_call_operand.hbm [shape: f32[128,128], index: 1, kind: input, shape index: {}]   ;;  %s228_s2 = inlined_call_operand.vmem [shape: f32[1,128], index: 2, kind: input, shape index: {}]   ;;  %s229_s3 = inlined_call_operand.hbm [shape: f32[8,128], index: 3, kind: output, shape index: {}]  }
   0x1   :  { %9 = vsyncpa [#allocation6], 0 }
   0x2   :  { %10 = vsyncpa [#allocation4], 0  ;;  %s16_s14 = sshll.u32 %s226_s0, 4  ;;  %s189_s15 = smov [#allocation2]   ;;  %s17_s14 = int_to_ptr.hbm [resolvable:$true] %s16_s14 }
   0x3   :  { %s18_s16 = sshll.u32 %s189_s15, 4  ;;  %s26_s19 = sshll.u32 %s227_s1, 4  ;;  %s19_s16 = int_to_ptr.vmem [resolvable:$true] %s18_s16  ;;  %s27_s19 = int_to_ptr.hbm [resolvable:$true] %s26_s19 }
   0x4   :  { %21 = dma.hbm_to_vmem [thread:$0]  %s17_s14, 128, %s19_s16, [#allocation3]  }
   0x5   :  { %s190_s20 = smov [#allocation5]   ;;  %s191_s22 = smov 128  }
   0x6   :  { %s28_s21 = sshll.u32 %s190_s20, 4  ;;  %s192_s23 = smov 8   ;;  %s29_s21 = int_to_ptr.vmem [resolvable:$true] %s28_s21 }
   0x7   :  { %34 = dma.hbm_to_vmem [thread:$0]  %s27_s19, 2048, %s29_s21, [#allocation6], %s191_s22, %s191_s22, %s192_s23  }
   0x8   :  { %183 = dma.done.wait [#allocation3], 128  }
   0x9   :  { %184 = vsyncadd [#allocation3], 4294967168 }
   0xa   :  { %185 = dma.done.wait [#allocation6], 2048  }
   0xb   :  { %186 = vsyncadd [#allocation6], 4294965248  ;;  %v61_v0 = vld [vmem:[#allocation5 + $0x78] sm:$0xff]  ;;  %v60_v1 = vld [vmem:[#allocation5 + $0x70] sm:$0xff]  ;;  %s193_s24 = smov [#allocation7]   ;;  %s94_s28 = sshll.u32 %s229_s3, 4  ;;  %s95_s28 = int_to_ptr.hbm [resolvable:$true] %s94_s28 }
   0xc   :  { %66 = vmatpush.msra.mxu0 %v61_v0  ;;  %v59_v2 = vld [vmem:[#allocation5 + $0x68] sm:$0xff]  ;;  %v58_v3 = vld [vmem:[#allocation5 + $0x60] sm:$0xff]  ;;  %v57_v4 = vld [vmem:[#allocation5 + $0x58] sm:$0xff]  ;;  %s92_s25 = sshll.u32 %s193_s24, 4  ;;  %s93_s25 = int_to_ptr.vmem [resolvable:$true] %s92_s25 }
   0xd   :  { %v56_v5 = vld [vmem:[#allocation5 + $0x50] sm:$0xff]  ;;  %v55_v6 = vld [vmem:[#allocation5 + $0x48] sm:$0xff]  ;;  %v54_v7 = vld [vmem:[#allocation5 + $0x40] sm:$0xff] }
   0xe   :  { %67 = vmatpush.msra.mxu0 %v60_v1  ;;  %v53_v8 = vld [vmem:[#allocation5 + $0x38] sm:$0xff]  ;;  %v52_v9 = vld [vmem:[#allocation5 + $0x30] sm:$0xff]  ;;  %v51_v10 = vld [vmem:[#allocation5 + $0x28] sm:$0xff] }
   0xf   :  { %v50_v11 = vld [vmem:[#allocation5 + $0x20] sm:$0xff]  ;;  %v49_v12 = vld [vmem:[#allocation5 + $0x18] sm:$0xff]  ;;  %v48_v13 = vld [vmem:[#allocation5 + $0x10] sm:$0xff] }
  0x10   :  { %68 = vmatpush.msra.mxu0 %v59_v2  ;;  %v47_v14 = vld [vmem:[#allocation5 + $0x8] sm:$0xff]  ;;  %v46_v15 = vld [vmem:[#allocation5] sm:$0xff]  ;;  %v45_v16 = vld [vmem:[#allocation2] sm:$0xff] }
  0x11   :  { %v110_v17 = vld [vmem:[%s228_s2] ss:$0 sm:$0xff] }
  0x12   :  { %69 = vmatpush.msra.mxu0 %v58_v3 }
  0x14   :  { %70 = vmatpush.msra.mxu0 %v57_v4 }
  0x16   :  { %71 = vmatpush.msra.mxu0 %v56_v5 }
  0x18   :  { %72 = vmatpush.msra.mxu0 %v55_v6 }
  0x1a   :  { %73 = vmatpush.msra.mxu0 %v54_v7 }
  0x1c   :  { %74 = vmatpush.msra.mxu0 %v53_v8 }
  0x1e   :  { %75 = vmatpush.msra.mxu0 %v52_v9 }
  0x20   :  { %76 = vmatpush.msra.mxu0 %v51_v10 }
  0x22   :  { %77 = vmatpush.msra.mxu0 %v50_v11 }
  0x24   :  { %78 = vmatpush.msra.mxu0 %v49_v12 }
  0x26   :  { %79 = vmatpush.msra.mxu0 %v48_v13 }
  0x28   :  { %80 = vmatpush.msra.mxu0 %v47_v14 }
  0x2a   :  { %81 = vmatpush.msra.mxu0 %v46_v15 }
  0x2b   :  { %82 = vmatmul.f32.vlgmr.msra.gmra.mxu0 %v45_v16 }
  0xa8   :  { %v83_v18 = vpop.f32.mrf.mxu0 }
  0xa9   :  { %v84_v19 = vadd.f32 %v110_v17, %v83_v18 }
  0xab   :  { %86 = vst [vmem:[#allocation7] sm:$0xff] %v84_v19 }
  0xac   :  { %97 = dma.vmem_to_hbm [thread:$0]  %s93_s25, 128, %s95_s28, [#allocation4]  }
  0xad   :  { %187 = dma.done.wait [#allocation4], 128  }
  0xae   :  { %188 = vsyncadd [#allocation4], 4294967168 }
  0xaf   :  { %102 = vsyncpa [#allocation3], 1 }
  0xb0   :  { %103 = vsyncpa [#allocation6], 1 }
  0xb1   :  { %104 = vsyncpa [#allocation4], 1 }

</bundles_post_ra>
